<compile_context>
chip_gen: v6e
topology: v6e:2x2x1
jax: 0.10.0
libtpu: 0.0.40
codegen_flags: <defaults>
</compile_context>

<pallas_src>
import jax
import jax.numpy as jnp
from jax.experimental import pallas as pl
from jax.experimental.pallas import tpu as pltpu


def _mbf_fused_kernel(app_ref, sp_ref, w1_ref, b1_ref, w2_ref, b2_ref,
                      w3_ref, b3_ref, out_ref):
    wdt = w1_ref.dtype
    # fc1 / fc2 over all branches at once (lane-dense K and output widths).
    a = jnp.dot(app_ref[...].astype(wdt), w1_ref[...],
                preferred_element_type=jnp.float32) + b1_ref[...]
    s = jnp.dot(sp_ref[...].astype(wdt), w2_ref[...],
                preferred_element_type=jnp.float32) + b2_ref[...]
    h = jnp.maximum(a * s, 0.0)
    # fc3: one matmul over the concatenated branch axis (== sum over branches).
    o = jnp.dot(h.astype(w3_ref.dtype), w3_ref[...],
                preferred_element_type=jnp.float32) + b3_ref[...]
    out_ref[...] = jnp.maximum(o, 0.0).astype(out_ref.dtype)


def _round_up(x, m):
    return ((x + m - 1) // m) * m


def _vmem_capacity_bytes():
    try:
        return int(pltpu.get_tpu_info().vmem_capacity_bytes)
    except Exception:
        return 64 * 1024 * 1024  # conservative (v7x per-TC VMEM)


def multi_branch_fusion(appearance, spatial, params, *, block_n=None,
                        param_dtype=None, vmem_budget_frac=0.75):
    """appearance: [N, A], spatial: [N, S] -> [N, R] (relu'd fused output)."""
    w1, b1, w2, b2, w3, b3 = (params[n] for n in ("w1", "b1", "w2", "b2", "w3", "b3"))
    N, A = appearance.shape
    _, S = spatial.shape
    C, sub, R = w3.shape
    Csub = C * sub

    # --- Fuse branch weights (trace-time layout plumbing, not kernel work). ---
    # Column block k of W1cat/W2cat is branch k's weight; row block k of W3flat
    # is branch k's fc3 weight; b3 is summed once over branches.
    w1c = jnp.moveaxis(w1, 0, 1).reshape(A, Csub)
    w2c = jnp.moveaxis(w2, 0, 1).reshape(S, Csub)
    w3f = w3.reshape(Csub, R)
    if param_dtype is not None:
        w1c = w1c.astype(param_dtype)
        w2c = w2c.astype(param_dtype)
        w3f = w3f.astype(param_dtype)
    # Biases stay f32 so the adds happen in f32 regardless of weight dtype.
    b1c = b1.reshape(1, Csub).astype(jnp.float32)
    b2c = b2.reshape(1, Csub).astype(jnp.float32)
    b3s = b3.sum(axis=0).reshape(1, R).astype(jnp.float32)

    act_bytes = jnp.dtype(appearance.dtype).itemsize
    w_bytes = jnp.dtype(w1c.dtype).itemsize
    # Sublane packing: 8 rows/vreg for 32-bit, 16 for 16-bit, 32 for 8-bit.
    row_align = 8 if act_bytes >= 4 else (16 if act_bytes == 2 else 32)

    # --- Generation-aware N tile + VMEM budget. -------------------------------
    vmem_cap = _vmem_capacity_bytes()
    budget = int(vmem_cap * vmem_budget_frac)
    # Single-buffered weights (constant across the grid) + f32 biases.
    weight_bytes = (A + S) * Csub * w_bytes + Csub * R * w_bytes + (2 * Csub + R) * 4
    # Per-row VMEM cost: double-buffered app/sp/out tiles + f32 a/s/h temps.
    per_row = 2 * (A + S + R) * act_bytes + 3 * Csub * 4

    tn_budget = max(row_align, (budget - weight_bytes) // per_row)
    tn_cap = 2048 if block_n is None else block_n
    tn = int(min(tn_budget, tn_cap, _round_up(N, row_align)))
    if tn >= 128:
        tn = (tn // 128) * 128          # MXU-friendly M
    else:
        tn = max(row_align, (tn // row_align) * row_align)

    vmem_needed = tn * per_row + weight_bytes
    vmem_limit = int(min(vmem_cap, max(vmem_needed + (8 << 20), 32 << 20)))

    grid = (pl.cdiv(N, tn),)            # ragged last block handled by Pallas

    resident = dict(pipeline_mode=pl.Buffered(1))   # constant blocks: 1 buffer

    grid_spec = pltpu.PrefetchScalarGridSpec(
        num_scalar_prefetch=0,
        grid=grid,
        in_specs=[
            pl.BlockSpec((tn, A), lambda i: (i, 0)),                 # appearance tile
            pl.BlockSpec((tn, S), lambda i: (i, 0)),                 # spatial tile
            pl.BlockSpec((A, Csub), lambda i: (0, 0), **resident),   # W1 concat
            pl.BlockSpec((1, Csub), lambda i: (0, 0), **resident),   # b1 concat
            pl.BlockSpec((S, Csub), lambda i: (0, 0), **resident),   # W2 concat
            pl.BlockSpec((1, Csub), lambda i: (0, 0), **resident),   # b2 concat
            pl.BlockSpec((Csub, R), lambda i: (0, 0), **resident),   # W3 flattened
            pl.BlockSpec((1, R), lambda i: (0, 0), **resident),      # sum_k b3_k
        ],
        out_specs=pl.BlockSpec((tn, R), lambda i: (i, 0)),
    )

    cost = pl.CostEstimate(
        flops=int(2 * N * Csub * (A + S + R)),
        transcendentals=0,
        bytes_accessed=int(N * (A + S + R) * act_bytes + weight_bytes),
    )

    return pl.pallas_call(
        _mbf_fused_kernel,
        out_shape=jax.ShapeDtypeStruct((N, R), appearance.dtype),
        grid_spec=grid_spec,
        compiler_params=pltpu.CompilerParams(
            dimension_semantics=("parallel",),      # no reduction axis remains
            vmem_limit_bytes=vmem_limit),
        cost_estimate=cost,
    )(appearance, spatial, w1c, b1c, w2c, b2c, w3f, b3s)


def init_params(key, appearance_size, spatial_size, representation_size, cardinality):
    """Deterministic init mimicking nn.Linear (uniform +/- 1/sqrt(fan_in))."""
    sub = representation_size // cardinality
    assert sub * cardinality == representation_size
    ks = jax.random.split(key, 6)

    def u(k, shape, fan_in):
        bound = 1.0 / jnp.sqrt(fan_in)
        return jax.random.uniform(k, shape, jnp.float32, -bound, bound)

    return {
        "w1": u(ks[0], (cardinality, appearance_size, sub), appearance_size),
        "b1": u(ks[1], (cardinality, 1, sub), appearance_size),
        "w2": u(ks[2], (cardinality, spatial_size, sub), spatial_size),
        "b2": u(ks[3], (cardinality, 1, sub), spatial_size),
        "w3": u(ks[4], (cardinality, sub, representation_size), sub),
        "b3": u(ks[5], (cardinality, 1, representation_size), sub),
    }


def reference(appearance, spatial, params):
    """Pure-JAX reference matching the PyTorch forward exactly (per-branch loop)."""
    w1, b1, w2, b2, w3, b3 = (params[n] for n in ("w1", "b1", "w2", "b2", "w3", "b3"))
    outs = []
    for k in range(w1.shape[0]):
        a = appearance @ w1[k] + b1[k]
        s = spatial @ w2[k] + b2[k]
        h = jnp.maximum(a * s, 0.0)
        outs.append(h @ w3[k] + b3[k])
    return jnp.maximum(jnp.stack(outs).sum(0), 0.0)


if __name__ == "__main__":
    # Small shapes consistent with the module's forward.
    appearance_size = 32
    spatial_size = 32
    representation_size = 32
    cardinality = 4

    key = jax.random.PRNGKey(0)
    k_app, k_sp, k_par = jax.random.split(key, 3)

    N = 16                     # number of box-pair instances
    appearance = jax.random.normal(k_app, (N, appearance_size), jnp.float32)
    spatial = jax.random.normal(k_sp, (N, spatial_size), jnp.float32)
    params = init_params(k_par, appearance_size, spatial_size,
                         representation_size, cardinality)
    ref = reference(appearance, spatial, params)

    # 1) f32, forced small tile -> exercises the multi-step "parallel" N grid.
    out = jax.block_until_ready(
        multi_branch_fusion(appearance, spatial, params, block_n=8))
    assert out.shape == (N, representation_size)
    assert jnp.allclose(out, ref, atol=1e-4, rtol=1e-5), "f32 mismatch vs reference"

    # 2) f32, ragged N (last block masked on write; no wrapper-side padding).
    Nr = 13
    out_r = jax.block_until_ready(
        multi_branch_fusion(appearance[:Nr], spatial[:Nr], params, block_n=8))
    assert out_r.shape == (Nr, representation_size)
    assert jnp.allclose(out_r, ref[:Nr], atol=1e-4, rtol=1e-5), "ragged mismatch"

    # 3) bf16 weights + auto (generation-aware) tile size; loose tolerance since
    #    matmul operands are quantized to bf16 (accumulation stays f32).
    out_bf16 = jax.block_until_ready(
        multi_branch_fusion(appearance, spatial, params,
                            param_dtype=jnp.bfloat16))
    assert out_bf16.shape == (N, representation_size)
    rel_err = float(jnp.max(jnp.abs(out_bf16 - ref)) /
                    (jnp.max(jnp.abs(ref)) + 1e-6))
    assert rel_err < 0.1, f"bf16 relative error too large: {rel_err}"

    print("KERNEL_OK")
</pallas_src>

<mosaic_0001>
module attributes {stable_mosaic.version = 11 : i64} {
  func.func @_mbf_fused_kernel(%arg0: i32, %arg1: memref<8x32xf32, #tpu.memory_space<vmem>>, %arg2: memref<8x32xf32, #tpu.memory_space<vmem>>, %arg3: memref<32x32xf32, #tpu.memory_space<vmem>>, %arg4: memref<1x32xf32, #tpu.memory_space<vmem>>, %arg5: memref<32x32xf32, #tpu.memory_space<vmem>>, %arg6: memref<1x32xf32, #tpu.memory_space<vmem>>, %arg7: memref<32x32xf32, #tpu.memory_space<vmem>>, %arg8: memref<1x32xf32, #tpu.memory_space<vmem>>, %arg9: memref<8x32xf32, #tpu.memory_space<vmem>>) attributes {dimension_semantics = [#tpu.dimension_semantics<parallel>], iteration_bounds = array<i64: 2>, scalar_prefetch = 0 : i64, scratch_operands = 0 : i64, tpu.core_type = #tpu.core_type<tc>, window_params = [{transform_indices = @transform_0, window_bounds = array<i64: 8, 32>}, {transform_indices = @transform_1, window_bounds = array<i64: 8, 32>}, {pipeline_mode = #tpu.pipeline_mode<synchronous>, transform_indices = @transform_2, window_bounds = array<i64: 32, 32>}, {pipeline_mode = #tpu.pipeline_mode<synchronous>, transform_indices = @transform_3, window_bounds = array<i64: 1, 32>}, {pipeline_mode = #tpu.pipeline_mode<synchronous>, transform_indices = @transform_4, window_bounds = array<i64: 32, 32>}, {pipeline_mode = #tpu.pipeline_mode<synchronous>, transform_indices = @transform_5, window_bounds = array<i64: 1, 32>}, {pipeline_mode = #tpu.pipeline_mode<synchronous>, transform_indices = @transform_6, window_bounds = array<i64: 32, 32>}, {pipeline_mode = #tpu.pipeline_mode<synchronous>, transform_indices = @transform_7, window_bounds = array<i64: 1, 32>}, {transform_indices = @transform_8, window_bounds = array<i64: 8, 32>}]} {
    %c0 = arith.constant 0 : index
    %c0_0 = arith.constant 0 : index
    %0 = vector.load %arg1[%c0, %c0_0] : memref<8x32xf32, #tpu.memory_space<vmem>>, vector<8x32xf32>
    %c0_1 = arith.constant 0 : index
    %c0_2 = arith.constant 0 : index
    %1 = vector.load %arg3[%c0_1, %c0_2] : memref<32x32xf32, #tpu.memory_space<vmem>>, vector<32x32xf32>
    %cst = arith.constant dense<0.000000e+00> : vector<8x32xf32>
    %2 = tpu.matmul %0, %1, %cst {dimension_numbers = #tpu.dot_dimension_numbers<[1], [0], [0], [1], [0, 0, 1, 1], [], []>} : vector<8x32xf32>, vector<32x32xf32>, vector<8x32xf32> -> vector<8x32xf32>
    %c0_3 = arith.constant 0 : index
    %c0_4 = arith.constant 0 : index
    %3 = vector.load %arg4[%c0_3, %c0_4] : memref<1x32xf32, #tpu.memory_space<vmem>>, vector<1x32xf32>
    %4 = vector.broadcast %3 : vector<1x32xf32> to vector<8x32xf32>
    %5 = arith.addf %2, %4 : vector<8x32xf32>
    %c0_5 = arith.constant 0 : index
    %c0_6 = arith.constant 0 : index
    %6 = vector.load %arg2[%c0_5, %c0_6] : memref<8x32xf32, #tpu.memory_space<vmem>>, vector<8x32xf32>
    %c0_7 = arith.constant 0 : index
    %c0_8 = arith.constant 0 : index
    %7 = vector.load %arg5[%c0_7, %c0_8] : memref<32x32xf32, #tpu.memory_space<vmem>>, vector<32x32xf32>
    %cst_9 = arith.constant dense<0.000000e+00> : vector<8x32xf32>
    %8 = tpu.matmul %6, %7, %cst_9 {dimension_numbers = #tpu.dot_dimension_numbers<[1], [0], [0], [1], [0, 0, 1, 1], [], []>} : vector<8x32xf32>, vector<32x32xf32>, vector<8x32xf32> -> vector<8x32xf32>
    %c0_10 = arith.constant 0 : index
    %c0_11 = arith.constant 0 : index
    %9 = vector.load %arg6[%c0_10, %c0_11] : memref<1x32xf32, #tpu.memory_space<vmem>>, vector<1x32xf32>
    %10 = vector.broadcast %9 : vector<1x32xf32> to vector<8x32xf32>
    %11 = arith.addf %8, %10 : vector<8x32xf32>
    %12 = arith.mulf %5, %11 : vector<8x32xf32>
    %cst_12 = arith.constant 0.000000e+00 : f32
    %13 = vector.broadcast %cst_12 : f32 to vector<8x32xf32>
    %14 = arith.maximumf %12, %13 : vector<8x32xf32>
    %c0_13 = arith.constant 0 : index
    %c0_14 = arith.constant 0 : index
    %15 = vector.load %arg7[%c0_13, %c0_14] : memref<32x32xf32, #tpu.memory_space<vmem>>, vector<32x32xf32>
    %cst_15 = arith.constant dense<0.000000e+00> : vector<8x32xf32>
    %16 = tpu.matmul %14, %15, %cst_15 {dimension_numbers = #tpu.dot_dimension_numbers<[1], [0], [0], [1], [0, 0, 1, 1], [], []>} : vector<8x32xf32>, vector<32x32xf32>, vector<8x32xf32> -> vector<8x32xf32>
    %c0_16 = arith.constant 0 : index
    %c0_17 = arith.constant 0 : index
    %17 = vector.load %arg8[%c0_16, %c0_17] : memref<1x32xf32, #tpu.memory_space<vmem>>, vector<1x32xf32>
    %18 = vector.broadcast %17 : vector<1x32xf32> to vector<8x32xf32>
    %19 = arith.addf %16, %18 : vector<8x32xf32>
    %cst_18 = arith.constant 0.000000e+00 : f32
    %20 = vector.broadcast %cst_18 : f32 to vector<8x32xf32>
    %21 = arith.maximumf %19, %20 : vector<8x32xf32>
    %c0_19 = arith.constant 0 : index
    %c0_20 = arith.constant 0 : index
    %22 = vector.load %arg9[%c0_19, %c0_20] : memref<8x32xf32, #tpu.memory_space<vmem>>, vector<8x32xf32>
    tpu.vector_store %arg9[%c0_19, %c0_20], %21 {strides = array<i32>} : memref<8x32xf32, #tpu.memory_space<vmem>>, vector<8x32xf32>,
    return
  }
  func.func @transform_0(%arg0: i32) -> (i32, i32) {
    %c0_i32 = arith.constant 0 : i32
    %c0_i32_0 = arith.constant 0 : i32
    return %arg0, %c0_i32 : i32, i32
  }
  func.func @transform_1(%arg0: i32) -> (i32, i32) {
    %c0_i32 = arith.constant 0 : i32
    %c0_i32_0 = arith.constant 0 : i32
    return %arg0, %c0_i32 : i32, i32
  }
  func.func @transform_2(%arg0: i32) -> (i32, i32) {
    %c0_i32 = arith.constant 0 : i32
    %c0_i32_0 = arith.constant 0 : i32
    %c0_i32_1 = arith.constant 0 : i32
    return %c0_i32, %c0_i32_0 : i32, i32
  }
  func.func @transform_3(%arg0: i32) -> (i32, i32) {
    %c0_i32 = arith.constant 0 : i32
    %c0_i32_0 = arith.constant 0 : i32
    %c0_i32_1 = arith.constant 0 : i32
    return %c0_i32, %c0_i32_0 : i32, i32
  }
  func.func @transform_4(%arg0: i32) -> (i32, i32) {
    %c0_i32 = arith.constant 0 : i32
    %c0_i32_0 = arith.constant 0 : i32
    %c0_i32_1 = arith.constant 0 : i32
    return %c0_i32, %c0_i32_0 : i32, i32
  }
  func.func @transform_5(%arg0: i32) -> (i32, i32) {
    %c0_i32 = arith.constant 0 : i32
    %c0_i32_0 = arith.constant 0 : i32
    %c0_i32_1 = arith.constant 0 : i32
    return %c0_i32, %c0_i32_0 : i32, i32
  }
  func.func @transform_6(%arg0: i32) -> (i32, i32) {
    %c0_i32 = arith.constant 0 : i32
    %c0_i32_0 = arith.constant 0 : i32
    %c0_i32_1 = arith.constant 0 : i32
    return %c0_i32, %c0_i32_0 : i32, i32
  }
  func.func @transform_7(%arg0: i32) -> (i32, i32) {
    %c0_i32 = arith.constant 0 : i32
    %c0_i32_0 = arith.constant 0 : i32
    %c0_i32_1 = arith.constant 0 : i32
    return %c0_i32, %c0_i32_0 : i32, i32
  }
  func.func @transform_8(%arg0: i32) -> (i32, i32) {
    %c0_i32 = arith.constant 0 : i32
    %c0_i32_0 = arith.constant 0 : i32
    return %arg0, %c0_i32 : i32, i32
  }
}

</mosaic_0001>

<bundles_post_ra>
// kernel: tpu_custom_call.1
= control target key start
LH: loop header
LB: loop body
LE: loop exit
PB: predicated region body
PF: predicated region fallthrough
CT: control target
= control target key end

     0   :  { %s1464_s0 = inlined_call_operand.hbm [shape: f32[16,32], index: 0, kind: input, shape index: {}]   ;;  %s1465_s1 = inlined_call_operand.hbm [shape: f32[16,32], index: 1, kind: input, shape index: {}]   ;;  %s1466_s2 = inlined_call_operand.hbm [shape: f32[32,32], index: 2, kind: input, shape index: {}]   ;;  %s1467_s3 = inlined_call_operand.vmem [shape: f32[1,32], index: 3, kind: input, shape index: {}]   ;;  %s1468_s4 = inlined_call_operand.hbm [shape: f32[32,32], index: 4, kind: input, shape index: {}]   ;;  %s1469_s5 = inlined_call_operand.vmem [shape: f32[1,32], index: 5, kind: input, shape index: {}]   ;;  %s1470_s6 = inlined_call_operand.hbm [shape: f32[32,32], index: 6, kind: input, shape index: {}]   ;;  %s1471_s7 = inlined_call_operand.vmem [shape: f32[1,32], index: 7, kind: input, shape index: {}]   ;;  %s1472_s8 = inlined_call_operand.hbm [shape: f32[16,32], index: 8, kind: output, shape index: {}]  }
   0x1   :  { %1478 = sst [smem:[#allocation19_spill]] %s1466_s2 }
   0x2   :  { %1479 = sst [smem:[#allocation20_spill]] %s1468_s4 }
   0x3   :  { %1480 = sst [smem:[#allocation21_spill]] %s1470_s6 }
   0x4   :  { %13 = vsyncpa [#allocation3], 0 }
   0x5   :  { %15 = vsyncpa [#allocation3 + $0x1], 0 }
   0x6   :  { %16 = vsyncpa [#allocation6], 0 }
   0x7   :  { %18 = vsyncpa [#allocation6 + $0x1], 0 }
   0x8   :  { %19 = vsyncpa [#allocation9], 0 }
   0x9   :  { %20 = vsyncpa [#allocation4], 0 }
   0xa   :  { %22 = vsyncpa [#allocation4 + $0x1], 0  ;;  %s1223_s27 = smov 0   ;;  %s1225_s28 = smov 0  }
   0xb   :  { %s1227_s29 = smov 0   ;;  %s1229_s30 = smov 0  }
   0xc LB: > { %1481 = sst [smem:[#allocation17_spill]] %s1162_s29  ;;  %s1244_s9 = sadd.s32 4294967295, %s1166_s30   ;;  %s1166_s30 = sphi %s1229_s30, %s1506_s30   ;;  %s1162_s29 = sphi %s1227_s29, %s1503_s29   ;;  %s1158_s28 = sphi %s1225_s28, %s1505_s28   ;;  %s1154_s27 = sphi %s1223_s27, %s1504_s27  }
   0xd   : > { %s795_s10 = sadd.s32 4294967294, %s1166_s30   ;;  %p48_p0 = scmp.ne.s32.totalorder %s1158_s28, %s1154_s27 }
   0xe   : > { %p1473_p1 = scmp.eq.s32.totalorder %s1244_s9, 0  ;;  %p230_p3 = scmp.eq.s32.totalorder %s795_s10, 1 }
   0xf   : > { %p796_p5 = scmp.ge.s32.totalorder %s1166_s30, 1  ;;  %p237_p7 = scmp.lt.s32.totalorder %s1166_s30, 3 }
  0x10   : > { %p1253_p4 = por %p1473_p1, %p48_p0  ;;  %p1258_p6 = por %p230_p3, %p48_p0 }
  0x11   : > { %p1263_p8 = pnand %p796_p5, %p237_p7  ;;  %s1168_s14 = smov [#allocation7]  }
  0x12   : > { %s1482_s11 = scalar_select %p1253_p4, 1, 0 }
  0x13   : > { %s1483_s12 = scalar_select %p1258_p6, 1, 0 }
  0x14   : > { %s1484_s13 = scalar_select %p1263_p8, 1, 0 }
  0x15   : > { %s249_s15 = sshll.u32 %s1168_s14, 4  ;;  %p888_p9 = pneg %p1263_p8  ;;  %s250_s15 = int_to_ptr.vmem [resolvable:$true] %s249_s15 }
  0x16   : > { %s1169_s17 = smov [#allocation8]   ;;  %s1170_s19 = smov [#allocation10]  }
  0x17   : > { %p1272_p11 = pnand %p888_p9, %p1473_p1  ;;  %s265_s18 = sshll.u32 %s1169_s17, 4  ;;  %s266_s18 = int_to_ptr.vmem [resolvable:$true] %s265_s18 }
  0x18   : > { %s281_s20 = sshll.u32 %s1170_s19, 4  ;;  %s967_s21 = scalar_lea.vmem %s250_s15, 512  ;;  %s282_s20 = int_to_ptr.vmem [resolvable:$true] %s281_s20 }
  0x19   : > { %p958_p12 = pneg %p1272_p11  ;;  %p968_p13 = scmp.ne.s32.totalorder %s250_s15, %s967_s21 }
  0x1a   : > { %p975_p5 = scmp.lt.s32.totalorder %s250_s15, %s250_s15  ;;  %p976_p7 = scmp.lt.s32.totalorder %s967_s21, %s967_s21 }
  0x1b   : > { %p970_p0 = pnand %p968_p13, %p958_p12 }
  0x1c   : > { %p977_p9 = por %p976_p7, %p975_p5 }
  0x1d   : > { %p971_p3 = pneg %p970_p0 }
  0x1f   : > { %p978_p10 = pnand %p977_p9, %p971_p3 }
  0x21   : > { %981 = shalt.err (!%p978_p10)
}
  0x22   : > { %s1171_s22 = smov 128   ;;  %s1172_s23 = smov 8  }
  0x23   : > { %s1486_s2 = sld [smem:[#allocation19_spill]]  ;;  %s993_s26 = scalar_lea.vmem %s266_s18, 512 }
  0x24   : > { %p994_p1 = scmp.ne.s32.totalorder %s266_s18, %s993_s26  ;;  %p1001_p2 = scmp.lt.s32.totalorder %s266_s18, %s266_s18 }
  0x25   : > { %p1002_p6 = scmp.lt.s32.totalorder %s993_s26, %s993_s26 }
  0x26   : > { %p996_p13 = pnand %p994_p1, %p958_p12 }
  0x27   : > { %p1003_p5 = por %p1002_p6, %p1001_p2 }
  0x28   : > { %p997_p0 = pneg %p996_p13 }
  0x29   : > { %891 = dma.hbm_to_vmem [thread:$0]  (!%p1272_p11), %s1486_s2, 512, %s250_s15, [#allocation6], %s1171_s22, %s1171_s22, %s1172_s23  }
  0x2a   : > { %p1004_p3 = pnand %p1003_p5, %p997_p0 }
  0x2c   : > { %1007 = shalt.err (!%p1004_p3)
}
  0x2d   : > { %s1487_s4 = sld [smem:[#allocation20_spill]]  ;;  %s1019_s15 = scalar_lea.vmem %s282_s20, 512 }
  0x2e   : > { %p1020_p10 = scmp.ne.s32.totalorder %s282_s20, %s1019_s15  ;;  %p1027_p9 = scmp.lt.s32.totalorder %s282_s20, %s282_s20 }
  0x2f   : > { %p1028_p13 = scmp.lt.s32.totalorder %s1019_s15, %s1019_s15 }
  0x30   : > { %p1022_p7 = pnand %p1020_p10, %p958_p12 }
  0x31   : > { %p1029_p4 = por %p1028_p13, %p1027_p9 }
  0x32   : > { %p1023_p1 = pneg %p1022_p7 }
  0x33   : > { %894 = dma.hbm_to_vmem [thread:$0]  (!%p1272_p11), %s1487_s4, 512, %s266_s18, [#allocation9], %s1171_s22, %s1171_s22, %s1172_s23  }
  0x34   : > { %p1030_p2 = pnand %p1029_p4, %p1023_p1 }
  0x36   : > { %1033 = shalt.err (!%p1030_p2)
}
  0x37   : > { %s1488_s6 = sld [smem:[#allocation21_spill]]  ;;  %s1303_s18 = sadd.s32 1, %s1166_s30  }
  0x38   : > { %s32_s21 = ssub.s32 %s1166_s30, %s1303_s18  ;;  %s35_s16 = sadd.s32 1, %s1162_s29 }
  0x39   : > { %p33_p4 = scmp.eq.s32.totalorder %s32_s21, 0  ;;  %p42_p6 = scmp.ne.s32.totalorder %s1162_s29, %s1158_s28 }
  0x3a   : > { %p43_p12 = scmp.eq.s32.totalorder %s1166_s30, 0  ;;  %p912_p0 = scmp.lt.s32.totalorder %s1166_s30, 2 }
  0x3b   : > { %s1313_s24 = scalar_select %p33_p4, %s1162_s29, %s35_s16  }
  0x3c   : > { %p44_p5 = por %p43_p12, %p42_p6  ;;  %p1490_p3 = scmp.eq.s32.totalorder %s1244_s9, 1 }
  0x3d   : > { %897 = dma.hbm_to_vmem [thread:$0]  (!%p1272_p11), %s1488_s6, 512, %s282_s20, [#allocation9], %s1171_s22, %s1171_s22, %s1172_s23  }
  0x3e   : > { %1489 = sst [smem:[#allocation18_spill]] %s1313_s24  ;;  %p1317_p10 = por %p1490_p3, %p42_p6 }
  0x3f   : > { %s298_s26 = sand.u32 1, %s1162_s29   ;;  %s802_s10 = sshll.u32 %s1166_s30, 7 }
  0x40   : > { %s1491_s25 = scalar_select %p1317_p10, 1, 0 }
  0x41   : > { %s1323_s20 = sshll.u32 %s298_s26, 3  ;;  %s1328_s14 = scalar_lea.hbm %s1464_s0, %s802_s10 }
  0x42   : > { %s302_s15 = scalar_lea.vmem [#allocation2], %s1323_s20  ;;  %p1331_p11 = pnand %p912_p0, %p44_p5 }
  0x43   : > { %s309_s17 = sshll.u32 %s302_s15, 4  ;;  %s1338_s2 = scalar_lea.hbm %s1465_s1, %s802_s10  ;;  %s310_s17 = int_to_ptr.vmem [resolvable:$true] %s309_s17 }
  0x44   : > { %s299_s22 = scalar_lea.sflag [#allocation3], %s298_s26  ;;  %s1034_s23 = scalar_lea.hbm %s1328_s14, 128 }
  0x45   : > { %p1035_p7 = scmp.ne.s32.totalorder %s1328_s14, %s1034_s23  ;;  %p1036_p1 = pneg %p1331_p11 }
  0x46   : > { %s1039_s6 = scalar_lea.hbm %s1464_s0, 256  ;;  %p1040_p2 = scmp.lt.s32.totalorder %s1328_s14, %s1464_s0 }
  0x47   : > { %p1037_p9 = pnand %p1036_p1, %p1035_p7  ;;  %p1041_p4 = scmp.lt.s32.totalorder %s1039_s6, %s1034_s23 }
  0x49   : > { %p1038_p13 = pneg %p1037_p9  ;;  %p1042_p6 = por %p1041_p4, %p1040_p2 }
  0x4b   : > { %p1043_p12 = pnand %p1042_p6, %p1038_p13 }
  0x4d   : > { %1046 = shalt.err (!%p1043_p12)
}
  0x4e   : > { %s1047_s26 = scalar_lea.vmem %s310_s17, 128  ;;  %s1173_s10 = smov [#allocation2]  }
  0x4f   : > { %p1048_p0 = scmp.ne.s32.totalorder %s310_s17, %s1047_s26  ;;  %s1052_s21 = sshll.u32 %s1173_s10, 4  ;;  %s1053_s21 = int_to_ptr.vmem [resolvable:$false] %s1052_s21 }
  0x50   : > { %s1054_s4 = scalar_lea.vmem %s1053_s21, 256  ;;  %p1055_p7 = scmp.lt.s32.totalorder %s310_s17, %s1053_s21 }
  0x51   : > { %p1050_p5 = pnand %p1048_p0, %p1036_p1  ;;  %p1056_p9 = scmp.lt.s32.totalorder %s1054_s4, %s1047_s26 }
  0x53   : > { %p1051_p3 = pneg %p1050_p5  ;;  %p1057_p10 = por %p1056_p9, %p1055_p7 }
  0x55   : > { %p1058_p8 = pnand %p1057_p10, %p1051_p3 }
  0x57   : > { %1061 = shalt.err (!%p1058_p8)
}
  0x58   : > { %901 = dma.hbm_to_vmem [thread:$0]  (!%p1331_p11), %s1328_s14, 128, %s310_s17, %s299_s22  }
  0x59   : > { %s316_s6 = sand.u32 1, %s1166_s30   ;;  %s320_s29 = scalar_lea.vmem [#allocation5], %s1323_s20 }
  0x5a   : > { %s327_s24 = sshll.u32 %s320_s29, 4  ;;  %s317_s16 = scalar_lea.sflag [#allocation6], %s316_s6  ;;  %s328_s24 = int_to_ptr.vmem [resolvable:$true] %s327_s24 }
  0x5b   : > { %s1062_s23 = scalar_lea.hbm %s1338_s2, 128  ;;  %s1067_s10 = scalar_lea.hbm %s1465_s1, 256 }
  0x5c   : > { %p1063_p13 = scmp.ne.s32.totalorder %s1338_s2, %s1062_s23  ;;  %p1068_p2 = scmp.lt.s32.totalorder %s1338_s2, %s1465_s1 }
  0x5d   : > { %p1069_p4 = scmp.lt.s32.totalorder %s1067_s10, %s1062_s23 }
  0x5e   : > { %p1065_p8 = pnand %p1063_p13, %p1036_p1 }
  0x5f   : > { %p1070_p6 = por %p1069_p4, %p1068_p2 }
  0x60   : > { %p1066_p10 = pneg %p1065_p8 }
  0x62   : > { %p1071_p12 = pnand %p1070_p6, %p1066_p10 }
  0x64   : > { %1074 = shalt.err (!%p1071_p12)
}
  0x65   : > { %s1075_s20 = scalar_lea.vmem %s328_s24, 128  ;;  %s1174_s14 = smov [#allocation5]  }
  0x66   : > { %p1076_p0 = scmp.ne.s32.totalorder %s328_s24, %s1075_s20  ;;  %s1080_s17 = sshll.u32 %s1174_s14, 4  ;;  %s1081_s17 = int_to_ptr.vmem [resolvable:$false] %s1080_s17 }
  0x67   : > { %s1082_s22 = scalar_lea.vmem %s1081_s17, 256  ;;  %p1083_p7 = scmp.lt.s32.totalorder %s328_s24, %s1081_s17 }
  0x68   : > { %p1078_p5 = pnand %p1076_p0, %p1036_p1  ;;  %p1084_p9 = scmp.lt.s32.totalorder %s1082_s22, %s1075_s20 }
  0x6a   : > { %p1079_p3 = pneg %p1078_p5  ;;  %p1085_p13 = por %p1084_p9, %p1083_p7 }
  0x6c   : > { %p1086_p8 = pnand %p1085_p13, %p1079_p3 }
  0x6e   : > { %1089 = shalt.err (!%p1086_p8)
}
  0x6f   : > { %904 = dma.hbm_to_vmem [thread:$0]  (!%p1331_p11), %s1338_s2, 128, %s328_s24, %s317_s16  }
  0x70   : > { %p1493_p10 = scmp.ne.s32.totalorder %s1484_s13, 0 }
  0x71   : > { %s1383_s6 = sand.u32 (!%p1493_p10), 1, %s1158_s28   ;;  %p1494_p1 = scmp.ne.s32.totalorder (!%p1493_p10), %s1482_s11, 0 }
  0x72   : > { %336 = sbr.rel (%p1493_p10) target bundleno = 549 (0x225), region = 52  ;;  %s1386_s29 = sshll.u32 (!%p1493_p10), %s1383_s6, 3 }
  0x73   : > { %s339_s23 = scalar_lea.sflag (!%p1493_p10), [#allocation3], %s1383_s6  ;;  %s342_s15 = scalar_lea.vmem (!%p1493_p10), [#allocation2], %s1386_s29 }
  0x77   : > { %1133 = dma.done.wait (%p1494_p1), %s339_s23, 128  }
  0x78   : > { %1135 = vsyncadd (%p1494_p1), %s339_s23, 4294967168  ;;  %s347_s2 = sand.u32 1, %s1244_s9   ;;  %s351_s19 = scalar_lea.vmem [#allocation5], %s1386_s29 }
  0x79   : > { %s348_s13 = scalar_lea.sflag [#allocation6], %s347_s2 }
  0x7a   : > { %1137 = dma.done.wait (%p1494_p1), %s348_s13, 128  }
  0x7b   : > { %1139 = vsyncadd (%p1494_p1), %s348_s13, 4294967168  ;;  %p1495_p11 = scmp.eq.s32.totalorder %s1244_s9, 0 }
  0x7d   : > { %1141 = dma.done.wait (%p1495_p11), [#allocation6], 512   ;;  %p1496_p2 = pmov %p1495_p11 }
  0x7f   : > { %1143 = vsyncadd (%p1496_p2), [#allocation6], 4294966784  ;;  %p1497_p4 = pmov %p1496_p2 }
  0x80   : > { %p1498_p6 = pmov %p1496_p2 }
  0x81   : > { %1145 = dma.done.wait (%p1497_p4), [#allocation9], 1024  }
  0x82   : > { %1147 = vsyncadd (%p1498_p6), [#allocation9], 4294966272  ;;  %v1175_v0 = vmov 0.0   ;;  %vm1176_vm0 = vmmov 0   ;;  %v405_v1 = vld [vmem:[#allocation7 + $0x18] sm:$0xff]  ;;  %v404_v3 = vld [vmem:[#allocation7 + $0x10] sm:$0xff] }
  0x83   : > { %837 = vmatprep.subr.mxu0 %v1175_v0  ;;  %848 = vmatprep.subr.mxu1 %v1175_v0  ;;  %v491_v2 = vld [vmem:[#allocation8 + $0x18] sm:$0xff]  ;;  %v490_v4 = vld [vmem:[#allocation8 + $0x10] sm:$0xff]  ;;  %v403_v5 = vld [vmem:[#allocation7 + $0x8] sm:$0xff]  ;;  %vm413_vm1 = vcmask 261120   ;;  %s819_s4 = sshll.u32 %s1244_s9, 7  ;;  %s400_s20 = scalar_lea.vmem [#allocation11], %s1386_s29 }
  0x84   : > { %845 = vmatprep.mubr.msk.f32.mxu0 %vm1176_vm0, %v1175_v0  ;;  %856 = vmatprep.mubr.msk.f32.mxu1 %vm1176_vm0, %v1175_v0  ;;  %v489_v6 = vld [vmem:[#allocation8 + $0x8] sm:$0xff]  ;;  %v402_v7 = vld [vmem:[#allocation7] sm:$0xff]  ;;  %v487_v10 = vld [vmem:[%s351_s19] sm:$0xff]  ;;  %s674_s14 = sshll.u32 %s400_s20, 4  ;;  %s672_s23 = scalar_lea.hbm %s1472_s8, %s819_s4  ;;  %s675_s14 = int_to_ptr.vmem [resolvable:$true] %s674_s14 }
  0x85   : > { %838 = vmatpush3.msra.mxu0 %v405_v1  ;;  %849 = vmatpush3.msra.mxu1 %v491_v2  ;;  %v488_v8 = vld [vmem:[#allocation8] sm:$0xff]  ;;  %v577_v11 = vld [vmem:[#allocation10 + $0x18] sm:$0xff]  ;;  %v576_v12 = vld [vmem:[#allocation10 + $0x10] sm:$0xff]  ;;  %s1090_s2 = scalar_lea.vmem %s675_s14, 128  ;;  %p1499_p0 = scmp.ne.s32.totalorder %s1491_s25, 0 }
  0x86   : > { %839 = vmatprep.subr.mxu0 %v1175_v0  ;;  %850 = vmatprep.subr.mxu1 %v1175_v0  ;;  %v401_v9 = vld [vmem:[%s342_s15] sm:$0xff]  ;;  %s661_s15 = scalar_lea.sflag [#allocation4], %s1383_s6  ;;  %p1091_p12 = scmp.ne.s32.totalorder %s675_s14, %s1090_s2 }
  0x87   : > { %840 = vmatpush3.msra.mxu0 %v404_v3  ;;  %851 = vmatpush3.msra.mxu1 %v490_v4  ;;  %v575_v13 = vld [vmem:[#allocation10 + $0x8] sm:$0xff]  ;;  %v574_v14 = vld [vmem:[#allocation10] sm:$0xff]  ;;  %s1177_s13 = smov [#allocation11]  }
  0x88   : > { %841 = vmatprep.subr.mxu0 %v1175_v0  ;;  %852 = vmatprep.subr.mxu1 %v1175_v0  ;;  %v812_v15 = vld [vmem:[%s1467_s3] ss:$0 sm:$0xff]  ;;  %p1092_p5 = pnand %p1091_p12, %p1499_p0  ;;  %s1094_s9 = sshll.u32 %s1177_s13, 4  ;;  %s1095_s9 = int_to_ptr.vmem [resolvable:$false] %s1094_s9 }
  0x89   : > { %842 = vmatpush3.msra.mxu0 %v403_v5  ;;  %853 = vmatpush3.msra.mxu1 %v489_v6  ;;  %v814_v16 = vld [vmem:[%s1469_s5] ss:$0 sm:$0xff]  ;;  %s1096_s29 = scalar_lea.vmem %s1095_s9, 256  ;;  %p1097_p7 = scmp.lt.s32.totalorder %s675_s14, %s1095_s9 }
  0x8a   : > { %843 = vmatprep.subr.mxu0 %v1175_v0  ;;  %854 = vmatprep.subr.mxu1 %v1175_v0  ;;  %v816_v25 = vld [vmem:[%s1471_s7] ss:$0 sm:$0xff]  ;;  %p1093_p3 = pneg %p1092_p5  ;;  %p1098_p9 = scmp.lt.s32.totalorder %s1096_s29, %s1090_s2 }
  0x8b   : > { %844 = vmatpush3.msra.mxu0 %v402_v7  ;;  %855 = vmatpush3.msra.mxu1 %v488_v8 }
  0x8c   : > { %846 = vmatmul.mubr.msk.f32.vlgmr.msra.gmra.mxu0 %vm413_vm1, %v401_v9  ;;  %857 = vmatmul.mubr.msk.f32.vlgmr.msra.gmra.mxu1 %vm413_vm1, %v487_v10  ;;  %p1099_p13 = por %p1098_p9, %p1097_p7 }
  0x8d   : > { %859 = vmatprep.subr.mxu0 %v1175_v0  ;;  %867 = vmatprep.mubr.msk.f32.mxu0 %vm1176_vm0, %v1175_v0 }
  0x8e   : > { %860 = vmatpush3.msra.mxu0 %v577_v11  ;;  %p1100_p8 = pnand %p1099_p13, %p1093_p3 }
  0x8f   : > { %861 = vmatprep.subr.mxu0 %v1175_v0 }
  0x90   : > { %862 = vmatpush3.msra.mxu0 %v576_v12 }
  0x91   : > { %863 = vmatprep.subr.mxu0 %v1175_v0 }
  0x92   : > { %864 = vmatpush3.msra.mxu0 %v575_v13 }
  0x93   : > { %865 = vmatprep.subr.mxu0 %v1175_v0 }
  0x94   : > { %866 = vmatpush3.msra.mxu0 %v574_v14 }
 0x14c   : > { %v483_v17 = vpop.f32.mrf.mxu0  ;;  %v568_v18 = vpop.f32.mrf.mxu1 }
 0x14d   : > { %v484_v19 = vadd.f32 %v812_v15, %v483_v17  ;;  %v569_v20 = vadd.f32 %v814_v16, %v568_v18 }
 0x14e   : > { %v847_v21 = vpop.f32.mrf.mxu0  ;;  %v858_v22 = vpop.f32.mrf.mxu1 }
 0x14f   : > { %v572_v23 = vmul.f32 %v569_v20, %v484_v19 }
 0x151   : > { %v573_v24 = vmax.f32 %v572_v23, 0.0 }
 0x153   : > { %868 = vmatmul.mubr.msk.f32.vlgmr.msra.gmra.mxu0 %vm413_vm1, %v573_v24 }
 0x213   : > { %v654_v26 = vpop.f32.mrf.mxu0 }
 0x214   : > { %v655_v27 = vadd.f32 %v816_v25, %v654_v26 }
 0x215   : > { %v869_v28 = vpop.f32.mrf.mxu0 }
 0x216   : > { %v658_v29 = vmax.f32 %v655_v27, 0.0 }
 0x218   : > { %659 = vst.msk [vmem:[%s400_s20] sm:$0xff] %vm413_vm1, %v658_v29 }
 0x219   : > { %1103 = shalt.err (!%p1100_p8)
}
 0x21a   : > { %s1104_s19 = scalar_lea.hbm %s672_s23, 128  ;;  %s1108_s24 = scalar_lea.hbm %s1472_s8, 256 }
 0x21b   : > { %p1105_p10 = scmp.ne.s32.totalorder %s672_s23, %s1104_s19  ;;  %p1109_p2 = scmp.lt.s32.totalorder %s672_s23, %s1472_s8 }
 0x21c   : > { %p1110_p4 = scmp.lt.s32.totalorder %s1108_s24, %s1104_s19 }
 0x21d   : > { %p1106_p1 = pnand %p1105_p10, %p1499_p0 }
 0x21e   : > { %p1111_p6 = por %p1110_p4, %p1109_p2 }
 0x21f   : > { %p1107_p11 = pneg %p1106_p1 }
 0x221   : > { %p1112_p12 = pnand %p1111_p6, %p1107_p11 }
 0x223   : > { %1115 = shalt.err (!%p1112_p12)
}
 0x224   : > { %886 = dma.vmem_to_hbm [thread:$0]  (%p1499_p0), %s675_s14, 128, %s672_s23, %s661_s15  }
 0x225 PF: > { %s686_s10 = sand.u32 1, %s1154_s27   ;;  %p1500_p5 = scmp.ne.s32.totalorder %s1483_s12, 0 }
 0x226   : > { %p1501_p3 = scmp.ge.s32.totalorder %s1166_s30, 2  ;;  %s687_s21 = scalar_lea.sflag [#allocation4], %s686_s10 }
 0x228   : > { %p906_p7 = pnand %p1501_p3, %p1500_p5 }
 0x22a   : > { %p907_p9 = pneg %p906_p7 }
 0x22c   : > { %1149 = dma.done.wait (%p907_p9), %s687_s21, 128  }
 0x22d   : > { %1151 = vsyncadd (%p907_p9), %s687_s21, 4294967168  ;;  %s1502_s4 = sld [smem:[#allocation17_spill]]  ;;  %p25_p13 = scmp.ge.s32.totalorder %s1303_s18, 4  }
 0x22e   : > { %s1503_s29 = sld [smem:[#allocation18_spill]]  ;;  %s1504_s27 = smov %s1158_s28 }
 0x22f   : > { %s1506_s30 = smov %s1303_s18  ;;  %27 = sbr.rel (!%p25_p13) target bundleno = 12 (0xc), region = 122 }
 0x233   : > { %s1505_s28 = smov %s1502_s4 }
 0x234   :  { %692 = vsyncpa [#allocation3], 1 }
 0x235   :  { %694 = vsyncpa [#allocation3 + $0x1], 1 }
 0x236   :  { %695 = vsyncpa [#allocation6], 1 }
 0x237   :  { %697 = vsyncpa [#allocation6 + $0x1], 1 }
 0x238   :  { %698 = vsyncpa [#allocation9], 1 }
 0x239   :  { %699 = vsyncpa [#allocation4], 1 }
 0x23a   :  { %701 = vsyncpa [#allocation4 + $0x1], 1 }

</bundles_post_ra>
